<compile_context>
chip_gen: v7x
topology: tpu7x:2x2x1
jax: 0.10.0
libtpu: 0.0.40
codegen_flags: <defaults>
</compile_context>

<pallas_src>
import numpy as np
import jax
import jax.numpy as jnp
from jax.experimental import pallas as pl
from jax.experimental.pallas import tpu as pltpu


# ----------------------------------------------------------------------------
# Helpers
# ----------------------------------------------------------------------------
def _activation_fn(name):
    name = name.lower()
    if name == "relu":
        return lambda x: jnp.maximum(x, 0.0)
    if name == "sigmoid":
        return jax.nn.sigmoid
    if name == "tanh":
        return jnp.tanh
    if name == "leakyrelu":
        return lambda x: jnp.where(x >= 0, x, 0.01 * x)  # PyTorch default slope
    if name == "none":
        return lambda x: x
    raise ValueError(f"unsupported activation: {name}")


def _conv_out(size, k, s):
    # VALID convolution (nn.Conv2d default: padding=0, dilation=1)
    return (size - k) // s + 1


# ----------------------------------------------------------------------------
# Fused Pallas kernel: all conv layers, one matmul per layer, single invocation
# ----------------------------------------------------------------------------
def _make_fused_cnn_kernel(layer_cfgs, activation, n_batch):
    """layer_cfgs: tuple of (k, s, h_out, w_out, c_in, c_out) per conv layer."""
    act = _activation_fn(activation)
    n_layers = len(layer_cfgs)

    def kernel(p0_ref, *rest):
        wb = rest[: 2 * n_layers]                 # w0, b0, w1, b1, ...
        out_ref = rest[2 * n_layers]
        scratch = rest[2 * n_layers + 1:]
        act_bufs = scratch[: n_layers - 1]        # (N, Hi, Wi, Ci) activations
        patch_bufs = scratch[n_layers - 1:]       # (Mi, k*k*Ci) im2col buffers

        # Layer-0 patch matrix was built in the wrapper (lane-dense, all batch).
        patches = p0_ref[...]                     # (N*H1*W1, k0*k0*C0)

        for li, (k, s, h_out, w_out, c_in, c_out) in enumerate(layer_cfgs):
            w_ref, b_ref = wb[2 * li], wb[2 * li + 1]

            # One MXU matmul per layer (default precision), bias + activation
            # as the epilogue — no zero-init / per-tap accumulation.
            h = jnp.dot(patches, w_ref[...], preferred_element_type=jnp.float32)
            h = act(h + b_ref[...])               # (N*h_out*w_out, c_out)

            if li == n_layers - 1:
                out_ref[...] = h.astype(out_ref.dtype)
                break

            # Stash activation as (N, H, W, C) in VMEM so the next layer can do
            # strided non-overlapping window gathers (stride may equal kernel).
            abuf = act_bufs[li]
            abuf[...] = h.reshape(n_batch, h_out, w_out, c_out)

            # Build the next layer's im2col matrix in a VMEM patch buffer:
            # rows = (n, y, x) output pixels, cols = (dy, dx, c_in) taps.
            kn, sn, hn, wn, cin_n, _ = layer_cfgs[li + 1]
            pbuf = patch_bufs[li]
            mn = n_batch * hn * wn
            for dy in range(kn):
                rows = pl.ds(dy, hn) if sn == 1 else pl.ds(dy, hn, stride=sn)
                for dx in range(kn):
                    cols = pl.ds(dx, wn) if sn == 1 else pl.ds(dx, wn, stride=sn)
                    piece = abuf[:, rows, cols, :]            # (N, hn, wn, cin_n)
                    off = (dy * kn + dx) * cin_n
                    pbuf[:, off:off + cin_n] = piece.reshape(mn, cin_n)
            patches = pbuf[...]                               # (mn, kn*kn*cin_n)

    return kernel


# ----------------------------------------------------------------------------
# Wrapper: PyTorch-style NCHW / OIHW in, NCHW out
# ----------------------------------------------------------------------------
def cnn_layers_forward(x_nchw, weights, biases, kernels, strides, activation="relu"):
    """Fused CNNLayers forward.

    x_nchw : (N, C0, H, W) float32
    weights[i] : (C_{i+1}, C_i, k_i, k_i)  (PyTorch OIHW)
    biases[i]  : (C_{i+1},)
    """
    n, c0, h, w = x_nchw.shape
    n_layers = len(weights)
    assert n_layers == len(kernels) == len(strides) == len(biases)

    # Per-layer static config + weight repacking OIHW -> (k*k*Cin, Cout),
    # K ordering (dy, dx, c_in) to match the patch matrices.
    layer_cfgs = []
    packed_ws, packed_bs = [], []
    cin, hh, ww = c0, h, w
    for wgt, b, k, s in zip(weights, biases, kernels, strides):
        cout = int(wgt.shape[0])
        h_out = _conv_out(hh, k, s)
        w_out = _conv_out(ww, k, s)
        layer_cfgs.append((k, s, h_out, w_out, cin, cout))
        packed_ws.append(
            jnp.transpose(wgt, (2, 3, 1, 0)).reshape(k * k * cin, cout).astype(jnp.float32)
        )
        packed_bs.append(b.reshape(1, cout).astype(jnp.float32))
        cin, hh, ww = cout, h_out, w_out

    # Layer-0 im2col (and the NCHW->NHWC transpose) done once in XLA so the
    # kernel's first layer is a single dense matmul over the whole batch.
    x_nhwc = jnp.transpose(x_nchw, (0, 2, 3, 1)).astype(jnp.float32)
    k0, s0, h1, w1, c_in0, _ = layer_cfgs[0]
    pieces = []
    for dy in range(k0):
        for dx in range(k0):
            pieces.append(
                x_nhwc[:, dy:dy + s0 * (h1 - 1) + 1:s0, dx:dx + s0 * (w1 - 1) + 1:s0, :]
            )
    p0 = jnp.concatenate(pieces, axis=-1).reshape(n * h1 * w1, k0 * k0 * c_in0)

    operands = [p0]
    for wk, bk in zip(packed_ws, packed_bs):
        operands.extend([wk, bk])

    _, _, h_l, w_l, _, c_l = layer_cfgs[-1]
    out_shape = jax.ShapeDtypeStruct((n * h_l * w_l, c_l), jnp.float32)

    # VMEM scratch: hidden activations (NHWC) + im2col patch buffers.
    scratch_shapes = [
        pltpu.VMEM((n, ho, wo, co), jnp.float32)
        for (_, _, ho, wo, _, co) in layer_cfgs[:-1]
    ] + [
        pltpu.VMEM((n * ho * wo, k * k * ci), jnp.float32)
        for (k, _, ho, wo, ci, _) in layer_cfgs[1:]
    ]

    kernel = _make_fused_cnn_kernel(tuple(layer_cfgs), activation, n)

    # Single invocation (no grid): whole-array blocks live in VMEM, batch is
    # folded into the matmul M dimension -> no per-grid-step overhead.
    y_rows = pl.pallas_call(
        kernel,
        out_shape=out_shape,
        scratch_shapes=scratch_shapes,
    )(*operands)

    # Rows are ordered (n, y, x) with channels last -> NHWC -> NCHW.
    return jnp.transpose(y_rows.reshape(n, h_l, w_l, c_l), (0, 3, 1, 2))


# ----------------------------------------------------------------------------
# Pure-JAX reference (same math, no Pallas) for the correctness check
# ----------------------------------------------------------------------------
def ref_cnn_layers(x_nchw, weights, biases, kernels, strides, activation="relu"):
    act = _activation_fn(activation)
    hcur = x_nchw
    for wgt, b, k, s in zip(weights, biases, kernels, strides):
        hcur = jax.lax.conv_general_dilated(
            hcur, wgt, window_strides=(s, s), padding="VALID",
            dimension_numbers=("NCHW", "OIHW", "NCHW"),
            precision=jax.lax.Precision.HIGHEST,
        )
        hcur = act(hcur + b[None, :, None, None])
    return hcur


# ----------------------------------------------------------------------------
# Main
# ----------------------------------------------------------------------------
if __name__ == "__main__":
    key = jax.random.PRNGKey(0)
    ks = jax.random.split(key, 8)

    # CNNLayers(channels=[4, 8, 16], kernels=[2, 2], strides=[2, 2], 'relu')
    channels = [4, 8, 16]
    kernels = [2, 2]
    strides = [2, 2]
    activation = "relu"

    N, H, W = 2, 16, 16
    x = jax.random.normal(ks[0], (N, channels[0], H, W), jnp.float32)

    weights, biases = [], []
    for i in range(len(channels) - 1):
        weights.append(
            0.1 * jax.random.normal(
                ks[2 * i + 1],
                (channels[i + 1], channels[i], kernels[i], kernels[i]),
                jnp.float32,
            )
        )
        biases.append(0.1 * jax.random.normal(ks[2 * i + 2], (channels[i + 1],), jnp.float32))

    y = cnn_layers_forward(x, weights, biases, kernels, strides, activation)
    jax.block_until_ready(y)

    y_ref = ref_cnn_layers(x, weights, biases, kernels, strides, activation)
    # Kernel matmuls use default MXU precision (per perf feedback) while the
    # reference uses HIGHEST, so tolerance is loosened accordingly.
    np.testing.assert_allclose(np.asarray(y), np.asarray(y_ref), rtol=2e-2, atol=2e-2)

    # 16x16 -> 8x8 -> 4x4 spatially, final channels = 16
    assert y.shape == (N, channels[-1], H // 4, W // 4)

    # TODO(synk): init_weights (normal_ init) is host-side parameter setup, not
    # part of the forward pass, so it is not implemented as a kernel.
    print("KERNEL_OK")
</pallas_src>

<mosaic_0001>
module attributes {stable_mosaic.version = 11 : i64} {
  func.func @kernel(%arg0: memref<128x16xf32, #tpu.memory_space<vmem>>, %arg1: memref<16x8xf32, #tpu.memory_space<vmem>>, %arg2: memref<1x8xf32, #tpu.memory_space<vmem>>, %arg3: memref<32x16xf32, #tpu.memory_space<vmem>>, %arg4: memref<1x16xf32, #tpu.memory_space<vmem>>, %arg5: memref<32x16xf32, #tpu.memory_space<vmem>>, %arg6: memref<2x8x8x8xf32, #tpu.memory_space<vmem>>, %arg7: memref<32x32xf32, #tpu.memory_space<vmem>>) attributes {dimension_semantics = [], scalar_prefetch = 0 : i64, scratch_operands = 2 : i64, tpu.core_type = #tpu.core_type<tc>} {
    %c0 = arith.constant 0 : index
    %c0_0 = arith.constant 0 : index
    %0 = vector.load %arg0[%c0, %c0_0] : memref<128x16xf32, #tpu.memory_space<vmem>>, vector<128x16xf32>
    %c0_1 = arith.constant 0 : index
    %c0_2 = arith.constant 0 : index
    %1 = vector.load %arg1[%c0_1, %c0_2] : memref<16x8xf32, #tpu.memory_space<vmem>>, vector<16x8xf32>
    %cst = arith.constant dense<0.000000e+00> : vector<128x8xf32>
    %2 = tpu.matmul %0, %1, %cst {dimension_numbers = #tpu.dot_dimension_numbers<[1], [0], [0], [1], [0, 0, 1, 1], [], []>} : vector<128x16xf32>, vector<16x8xf32>, vector<128x8xf32> -> vector<128x8xf32>
    %c0_3 = arith.constant 0 : index
    %c0_4 = arith.constant 0 : index
    %3 = vector.load %arg2[%c0_3, %c0_4] : memref<1x8xf32, #tpu.memory_space<vmem>>, vector<1x8xf32>
    %4 = vector.broadcast %3 : vector<1x8xf32> to vector<128x8xf32>
    %5 = arith.addf %2, %4 : vector<128x8xf32>
    %cst_5 = arith.constant 0.000000e+00 : f32
    %6 = vector.broadcast %cst_5 : f32 to vector<128x8xf32>
    %7 = arith.maximumf %5, %6 : vector<128x8xf32>
    %8 = vector.shape_cast %7 : vector<128x8xf32> to vector<2x8x8x8xf32>
    %c0_6 = arith.constant 0 : index
    %c0_7 = arith.constant 0 : index
    %c0_8 = arith.constant 0 : index
    %c0_9 = arith.constant 0 : index
    %9 = vector.load %arg6[%c0_6, %c0_7, %c0_8, %c0_9] : memref<2x8x8x8xf32, #tpu.memory_space<vmem>>, vector<2x8x8x8xf32>
    tpu.vector_store %arg6[%c0_6, %c0_7, %c0_8, %c0_9], %8 {strides = array<i32>} : memref<2x8x8x8xf32, #tpu.memory_space<vmem>>, vector<2x8x8x8xf32>,
    %c0_10 = arith.constant 0 : index
    %c0_11 = arith.constant 0 : index
    %c0_12 = arith.constant 0 : index
    %c0_13 = arith.constant 0 : index
    %10 = tpu.strided_load %arg6[%c0_10, %c0_11, %c0_12, %c0_13] {strides = array<i32: 1, 2, 2, 1>} : memref<2x8x8x8xf32, #tpu.memory_space<vmem>>, vector<2x4x4x8xf32>
    %11 = vector.shape_cast %10 : vector<2x4x4x8xf32> to vector<32x8xf32>
    %c0_14 = arith.constant 0 : index
    %c0_15 = arith.constant 0 : index
    %12 = vector.load %arg7[%c0_14, %c0_15] : memref<32x32xf32, #tpu.memory_space<vmem>>, vector<32x8xf32>
    tpu.vector_store %arg7[%c0_14, %c0_15], %11 {strides = array<i32>} : memref<32x32xf32, #tpu.memory_space<vmem>>, vector<32x8xf32>,
    %c0_16 = arith.constant 0 : index
    %c0_17 = arith.constant 0 : index
    %c1 = arith.constant 1 : index
    %c0_18 = arith.constant 0 : index
    %13 = tpu.strided_load %arg6[%c0_16, %c0_17, %c1, %c0_18] {strides = array<i32: 1, 2, 2, 1>} : memref<2x8x8x8xf32, #tpu.memory_space<vmem>>, vector<2x4x4x8xf32>
    %14 = vector.shape_cast %13 : vector<2x4x4x8xf32> to vector<32x8xf32>
    %c0_19 = arith.constant 0 : index
    %c8 = arith.constant 8 : index
    %15 = vector.load %arg7[%c0_19, %c8] : memref<32x32xf32, #tpu.memory_space<vmem>>, vector<32x8xf32>
    tpu.vector_store %arg7[%c0_19, %c8], %14 {strides = array<i32>} : memref<32x32xf32, #tpu.memory_space<vmem>>, vector<32x8xf32>,
    %c0_20 = arith.constant 0 : index
    %c1_21 = arith.constant 1 : index
    %c0_22 = arith.constant 0 : index
    %c0_23 = arith.constant 0 : index
    %16 = tpu.strided_load %arg6[%c0_20, %c1_21, %c0_22, %c0_23] {strides = array<i32: 1, 2, 2, 1>} : memref<2x8x8x8xf32, #tpu.memory_space<vmem>>, vector<2x4x4x8xf32>
    %17 = vector.shape_cast %16 : vector<2x4x4x8xf32> to vector<32x8xf32>
    %c0_24 = arith.constant 0 : index
    %c16 = arith.constant 16 : index
    %18 = vector.load %arg7[%c0_24, %c16] : memref<32x32xf32, #tpu.memory_space<vmem>>, vector<32x8xf32>
    tpu.vector_store %arg7[%c0_24, %c16], %17 {strides = array<i32>} : memref<32x32xf32, #tpu.memory_space<vmem>>, vector<32x8xf32>,
    %c0_25 = arith.constant 0 : index
    %c1_26 = arith.constant 1 : index
    %c1_27 = arith.constant 1 : index
    %c0_28 = arith.constant 0 : index
    %19 = tpu.strided_load %arg6[%c0_25, %c1_26, %c1_27, %c0_28] {strides = array<i32: 1, 2, 2, 1>} : memref<2x8x8x8xf32, #tpu.memory_space<vmem>>, vector<2x4x4x8xf32>
    %20 = vector.shape_cast %19 : vector<2x4x4x8xf32> to vector<32x8xf32>
    %c0_29 = arith.constant 0 : index
    %c24 = arith.constant 24 : index
    %21 = vector.load %arg7[%c0_29, %c24] : memref<32x32xf32, #tpu.memory_space<vmem>>, vector<32x8xf32>
    tpu.vector_store %arg7[%c0_29, %c24], %20 {strides = array<i32>} : memref<32x32xf32, #tpu.memory_space<vmem>>, vector<32x8xf32>,
    %c0_30 = arith.constant 0 : index
    %c0_31 = arith.constant 0 : index
    %22 = vector.load %arg7[%c0_30, %c0_31] : memref<32x32xf32, #tpu.memory_space<vmem>>, vector<32x32xf32>
    %c0_32 = arith.constant 0 : index
    %c0_33 = arith.constant 0 : index
    %23 = vector.load %arg3[%c0_32, %c0_33] : memref<32x16xf32, #tpu.memory_space<vmem>>, vector<32x16xf32>
    %cst_34 = arith.constant dense<0.000000e+00> : vector<32x16xf32>
    %24 = tpu.matmul %22, %23, %cst_34 {dimension_numbers = #tpu.dot_dimension_numbers<[1], [0], [0], [1], [0, 0, 1, 1], [], []>} : vector<32x32xf32>, vector<32x16xf32>, vector<32x16xf32> -> vector<32x16xf32>
    %c0_35 = arith.constant 0 : index
    %c0_36 = arith.constant 0 : index
    %25 = vector.load %arg4[%c0_35, %c0_36] : memref<1x16xf32, #tpu.memory_space<vmem>>, vector<1x16xf32>
    %26 = vector.broadcast %25 : vector<1x16xf32> to vector<32x16xf32>
    %27 = arith.addf %24, %26 : vector<32x16xf32>
    %cst_37 = arith.constant 0.000000e+00 : f32
    %28 = vector.broadcast %cst_37 : f32 to vector<32x16xf32>
    %29 = arith.maximumf %27, %28 : vector<32x16xf32>
    %c0_38 = arith.constant 0 : index
    %c0_39 = arith.constant 0 : index
    %30 = vector.load %arg5[%c0_38, %c0_39] : memref<32x16xf32, #tpu.memory_space<vmem>>, vector<32x16xf32>
    tpu.vector_store %arg5[%c0_38, %c0_39], %29 {strides = array<i32>} : memref<32x16xf32, #tpu.memory_space<vmem>>, vector<32x16xf32>,
    return
  }
}

</mosaic_0001>

<bundles_post_ra>
// kernel: tpu_custom_call.1
= control target key start
LH: loop header
LB: loop body
LE: loop exit
PB: predicated region body
PF: predicated region fallthrough
CT: control target
= control target key end

     0   :  { %vm45_vm0 = vcmask 130048   ;;  %vm255_vm1 = vcmask 64512   ;;  %s691_s8 = smov 8   ;;  %vm347_vm2 = vcmask 130112   ;;  %vm392_vm3 = vcmask 195712   ;;  %s892_s1 = inlined_call_operand.vmem [shape: f32[16,8], index: 1, kind: input, shape index: {}]   ;;  %s893_s0 = inlined_call_operand.vmem [shape: f32[128,16], index: 0, kind: input, shape index: {}]   ;;  %s894_s2 = inlined_call_operand.vmem [shape: f32[1,8], index: 2, kind: input, shape index: {}]   ;;  %s895_s3 = inlined_call_operand.vmem [shape: f32[32,16], index: 3, kind: input, shape index: {}]   ;;  %s896_s4 = inlined_call_operand.vmem [shape: f32[1,16], index: 4, kind: input, shape index: {}]   ;;  %s897_s5 = inlined_call_operand.vmem [shape: f32[32,16], index: 5, kind: output, shape index: {}]  }
   0x1   :  { %v36_v0 = vld [vmem:[%s892_s1] sm:$0xff]  ;;  %v37_v1 = vld [vmem:[%s892_s1 + $0x8] sm:$0xff]  ;;  %v30_v4 = vld [vmem:[%s893_s0 + $0x50] sm:$0xff]  ;;  %vm437_vm4 = vcmask 261312   ;;  %vm457_vm5 = vcmask 261120  }
   0x2   :  { %v20_v2 = vld [vmem:[%s893_s0] sm:$0xff]  ;;  %v672_v3 = vpack.c.bf16 %v37_v1, %v36_v0  ;;  %649 = vmatprep.mubr.msk.f32.mxu1 %vm45_vm0, %v30_v4  ;;  %v21_v5 = vld [vmem:[%s893_s0 + $0x8] sm:$0xff]  ;;  %v31_v6 = vld [vmem:[%s893_s0 + $0x58] sm:$0xff] }
   0x3   :  { %634 = vmatprep.mubr.msk.f32.mxu0 %vm45_vm0, %v20_v2  ;;  %v22_v7 = vld [vmem:[%s893_s0 + $0x10] sm:$0xff]  ;;  %v32_v8 = vld [vmem:[%s893_s0 + $0x60] sm:$0xff]  ;;  %v23_v9 = vld [vmem:[%s893_s0 + $0x18] sm:$0xff] }
   0x4   :  { %673 = vmatprep.subr.bf16.mxu0 %v672_v3  ;;  %684 = vmatprep.subr.bf16.mxu1 %v672_v3  ;;  %v33_v10 = vld [vmem:[%s893_s0 + $0x68] sm:$0xff]  ;;  %v24_v11 = vld [vmem:[%s893_s0 + $0x20] sm:$0xff]  ;;  %v34_v12 = vld [vmem:[%s893_s0 + $0x70] sm:$0xff] }
   0x5   :  { %675 = vmatpush3.bf16.msra.mxu0 %v672_v3  ;;  %685 = vmatpush3.bf16.msra.mxu1 %v672_v3  ;;  %v25_v13 = vld [vmem:[%s893_s0 + $0x28] sm:$0xff]  ;;  %v35_v14 = vld [vmem:[%s893_s0 + $0x78] sm:$0xff]  ;;  %v26_v15 = vld [vmem:[%s893_s0 + $0x30] sm:$0xff] }
   0x6   :  { %v27_v16 = vld [vmem:[%s893_s0 + $0x38] sm:$0xff]  ;;  %v28_v17 = vld [vmem:[%s893_s0 + $0x40] sm:$0xff]  ;;  %v29_v18 = vld [vmem:[%s893_s0 + $0x48] sm:$0xff]  ;;  %s689_s0 = smov 24  }
   0x7   :  { %v795_v19 = vld [vmem:[%s894_s2] ss:$0 sm:$0xff]  ;;  %s690_s2 = smov 16  }
   0x8   :  { %635 = vmatmul.mubr.msk.f32.vlgmr.msra.gmra.mrb[0].mxu0 %vm45_vm0, %v21_v5  ;;  %650 = vmatmul.mubr.msk.f32.vlgmr.msra.gmra.mrb[0].mxu1 %vm45_vm0, %v31_v6 }
   0x9   :  { %637 = vmatprep.mubr.msk.f32.mxu0 %vm45_vm0, %v22_v7  ;;  %652 = vmatprep.mubr.msk.f32.mxu1 %vm45_vm0, %v32_v8 }
   0xc   :  { %638 = vmatmul.mubr.msk.f32.gmra.mrb[2].mxu0 %vm45_vm0, %v23_v9  ;;  %653 = vmatmul.mubr.msk.f32.gmra.mrb[2].mxu1 %vm45_vm0, %v33_v10 }
   0xd   :  { %640 = vmatprep.mubr.msk.f32.mxu0 %vm45_vm0, %v24_v11  ;;  %655 = vmatprep.mubr.msk.f32.mxu1 %vm45_vm0, %v34_v12 }
  0x10   :  { %641 = vmatmul.mubr.msk.f32.gmra.mrb[4].mxu0 %vm45_vm0, %v25_v13  ;;  %656 = vmatmul.mubr.msk.f32.gmra.mrb[4].mxu1 %vm45_vm0, %v35_v14  ;;  %v446_v14 = vld [vmem:[%s895_s3] sm:$0xff] }
  0x11   :  { %643 = vmatprep.mubr.msk.f32.mxu0 %vm45_vm0, %v26_v15  ;;  %v447_v15 = vld [vmem:[%s895_s3 + $0x8] sm:$0xff] }
  0x14   :  { %644 = vmatmul.mubr.msk.f32.gmra.mrb[6].mxu0 %vm45_vm0, %v27_v16 }
  0x15   :  { %646 = vmatprep.mubr.msk.f32.mxu0 %vm45_vm0, %v28_v17 }
  0x18   :  { %647 = vmatmul.mubr.msk.f32.gmra.mrb[8].mxu0 %vm45_vm0, %v29_v18  ;;  %v676_v18 = vpack.c.bf16 %v447_v15, %v446_v14 }
  0x1a   :  { %677 = vmatprep.subr.bf16.mxu1 %v676_v18 }
  0x1b   :  { %679 = vmatpush3.bf16.msra.mxu1 %v676_v18 }
  0xdb   :  { %v636_v20 = vpop.f32.mrb[0].mxu0  ;;  %v651_v21 = vpop.f32.mrb[0].mxu1 }
  0xdc   :  { %v166_v22 = vadd.f32 %v636_v20, %v795_v19  ;;  %v160_v23 = vpop.f32.mrb[1].mxu0  ;;  %v216_v24 = vadd.f32 %v651_v21, %v795_v19  ;;  %v210_v25 = vpop.f32.mrb[1].mxu1 }
  0xdd   :  { %v161_v26 = vadd.f32 %v795_v19, %v160_v23  ;;  %v211_v27 = vadd.f32 %v795_v19, %v210_v25 }
  0xde   :  { %v240_v28 = vmax.f32 %v166_v22, 0.0  ;;  %v250_v29 = vmax.f32 %v216_v24, 0.0 }
  0xdf   :  { %v239_v30 = vmax.f32 %v161_v26, 0.0  ;;  %v249_v31 = vmax.f32 %v211_v27, 0.0  ;;  %v639_v32 = vpop.f32.mrb[2].mxu0  ;;  %v654_v33 = vpop.f32.mrb[2].mxu1 }
  0xe0   :  { %257 = vst.msk [vmem:[#allocation2 + $0x8] sm:$0xff] %vm255_vm1, %v240_v28  ;;  %267 = vst.msk [vmem:[#allocation2 + $0x58] sm:$0xff] %vm255_vm1, %v250_v29  ;;  %v176_v34 = vadd.f32 %v639_v32, %v795_v19  ;;  %v170_v35 = vpop.f32.mrb[3].mxu0  ;;  %v226_v36 = vadd.f32 %v654_v33, %v795_v19  ;;  %v220_v37 = vpop.f32.mrb[3].mxu1 }
  0xe1   :  { %256 = vst.msk [vmem:[#allocation2] sm:$0xff] %vm255_vm1, %v239_v30  ;;  %266 = vst.msk [vmem:[#allocation2 + $0x50] sm:$0xff] %vm255_vm1, %v249_v31  ;;  %v171_v38 = vadd.f32 %v795_v19, %v170_v35  ;;  %v221_v39 = vadd.f32 %v795_v19, %v220_v37 }
  0xe2   :  { %v242_v40 = vmax.f32 %v176_v34, 0.0  ;;  %v252_v41 = vmax.f32 %v226_v36, 0.0 }
  0xe3   :  { %v241_v42 = vmax.f32 %v171_v38, 0.0  ;;  %v251_v43 = vmax.f32 %v221_v39, 0.0  ;;  %v642_v44 = vpop.f32.mrb[4].mxu0  ;;  %v657_v45 = vpop.f32.mrb[4].mxu1 }
  0xe4   :  { %259 = vst.msk [vmem:[#allocation2 + $0x18] sm:$0xff] %vm255_vm1, %v242_v40  ;;  %269 = vst.msk [vmem:[#allocation2 + $0x68] sm:$0xff] %vm255_vm1, %v252_v41  ;;  %v186_v46 = vadd.f32 %v642_v44, %v795_v19  ;;  %v236_v47 = vadd.f32 %v657_v45, %v795_v19  ;;  %v180_v48 = vpop.f32.mrb[5].mxu0  ;;  %v230_v49 = vpop.f32.mrb[5].mxu1  ;;  %v448_v44 = vld [vmem:[%s895_s3 + $0x10] sm:$0xff]  ;;  %v449_v45 = vld [vmem:[%s895_s3 + $0x18] sm:$0xff] }
  0xe5   :  { %258 = vst.msk [vmem:[#allocation2 + $0x10] sm:$0xff] %vm255_vm1, %v241_v42  ;;  %268 = vst.msk [vmem:[#allocation2 + $0x60] sm:$0xff] %vm255_vm1, %v251_v43  ;;  %v181_v50 = vadd.f32 %v795_v19, %v180_v48  ;;  %v231_v51 = vadd.f32 %v795_v19, %v230_v49 }
  0xe6   :  { %v244_v52 = vmax.f32 %v186_v46, 0.0  ;;  %v254_v53 = vmax.f32 %v236_v47, 0.0  ;;  %v680_v47 = vpack.c.bf16 %v449_v45, %v448_v44 }
  0xe7   :  { %v243_v54 = vmax.f32 %v181_v50, 0.0  ;;  %v253_v55 = vmax.f32 %v231_v51, 0.0  ;;  %v645_v56 = vpop.f32.mrb[6].mxu0  ;;  %v398_v60 = vld [vmem:[#allocation2 + $0x9] ss:$2 sm:$0xf] }
  0xe8   :  { %261 = vst.msk [vmem:[#allocation2 + $0x28] sm:$0xff] %vm255_vm1, %v244_v52  ;;  %271 = vst.msk [vmem:[#allocation2 + $0x78] sm:$0xff] %vm255_vm1, %v254_v53  ;;  %v196_v57 = vadd.f32 %v645_v56, %v795_v19  ;;  %v190_v58 = vpop.f32.mrb[7].mxu0  ;;  %v353_v62 = vld [vmem:[#allocation2 + $0x8] ss:$2 sm:$0xf]  ;;  %681 = vmatprep.subr.bf16.mxu1 %v680_v47 }
  0xe9   :  { %260 = vst.msk [vmem:[#allocation2 + $0x20] sm:$0xff] %vm255_vm1, %v243_v54  ;;  %270 = vst.msk [vmem:[#allocation2 + $0x70] sm:$0xff] %vm255_vm1, %v253_v55  ;;  %v191_v59 = vadd.f32 %v795_v19, %v190_v58  ;;  %v308_v8 = vld [vmem:[#allocation2 + $0x1] ss:$2 sm:$0xf]  ;;  %683 = vmatpush3.bf16.msra.mxu1 %v680_v47 }
  0xea   :  { %v246_v61 = vmax.f32 %v196_v57, 0.0  ;;  %v363_v26 = vld [vmem:[#allocation2 + $0x58] ss:$2 sm:$0xf] }
  0xeb   :  { %v245_v63 = vmax.f32 %v191_v59, 0.0  ;;  %v648_v0 = vpop.f32.mrb[8].mxu0  ;;  %v400_v1 = vld [vmem:[#allocation2 + $0x19] ss:$2 sm:$0xf] }
  0xec   :  { %263 = vst.msk [vmem:[#allocation2 + $0x38] sm:$0xff] %vm255_vm1, %v246_v61  ;;  %v206_v2 = vadd.f32 %v648_v0, %v795_v19  ;;  %v200_v3 = vpop.f32.mrb[9].mxu0  ;;  %v421_v4 = vcombine.low %v398_v60, %v400_v1  ;;  %v355_v5 = vld [vmem:[#allocation2 + $0x18] ss:$2 sm:$0xf] }
  0xed   :  { %262 = vst.msk [vmem:[#allocation2 + $0x30] sm:$0xff] %vm255_vm1, %v245_v63  ;;  %v201_v6 = vadd.f32 %v795_v19, %v200_v3  ;;  %v376_v7 = vcombine.low %v353_v62, %v355_v5  ;;  %v310_v9 = vld [vmem:[#allocation2 + $0x11] ss:$2 sm:$0xf] }
  0xee   :  { %v248_v10 = vmax.f32 %v206_v2, 0.0  ;;  %425 = vrot.lane.b32.xlu0 %v421_v4, %s689_s0  ;;  %v365_v11 = vld [vmem:[#allocation2 + $0x68] ss:$2 sm:$0xf]  ;;  %v331_v17 = vcombine.low %v308_v8, %v310_v9 }
  0xef   :  { %v247_v12 = vmax.f32 %v201_v6, 0.0  ;;  %380 = vrot.lane.b32.xlu1 %v376_v7, %s690_s2  ;;  %v367_v13 = vld [vmem:[#allocation2 + $0x78] ss:$2 sm:$0xf] }
  0xf0   :  { %265 = vst.msk [vmem:[#allocation2 + $0x48] sm:$0xff] %vm255_vm1, %v248_v10  ;;  %v379_v16 = vcombine.low %v365_v11, %v367_v13  ;;  %v322_v19 = vld [vmem:[#allocation2 + $0x71] ss:$2 sm:$0xf]  ;;  %v599_v10 = vld [vmem:[%s896_s4] ss:$0 sm:$0xff] }
  0xf1   :  { %264 = vst.msk [vmem:[#allocation2 + $0x40] sm:$0xff] %vm255_vm1, %v247_v12  ;;  %v320_v20 = vld [vmem:[#allocation2 + $0x61] ss:$2 sm:$0xf] }
  0xf2   :  { %335 = vrot.lane.b32.xlu0 %v331_v17, %s691_s8  ;;  %v312_v21 = vld [vmem:[#allocation2 + $0x21] ss:$2 sm:$0xf]  ;;  %v334_v24 = vcombine.low %v320_v20, %v322_v19  ;;  %v274_v27 = vld [vmem:[#allocation2 + $0x10] ss:$2 sm:$0xf] }
  0xf3   :  { %386 = vrot.lane.b32.xlu1 %v379_v16, %s690_s2  ;;  %v359_v23 = vld [vmem:[#allocation2 + $0x38] ss:$2 sm:$0xf]  ;;  %v272_v28 = vld [vmem:[#allocation2] ss:$2 sm:$0xf] }
  0xf4   :  { %v314_v22 = vld [vmem:[#allocation2 + $0x31] ss:$2 sm:$0xf]  ;;  %v295_v29 = vcombine.low %v272_v28, %v274_v27  ;;  %v284_v30 = vld [vmem:[#allocation2 + $0x60] ss:$2 sm:$0xf] }
  0xf5   :  { %v332_v25 = vcombine.low %v312_v21, %v314_v22  ;;  %v286_v31 = vld [vmem:[#allocation2 + $0x70] ss:$2 sm:$0xf]  ;;  %v357_v32 = vld [vmem:[#allocation2 + $0x28] ss:$2 sm:$0xf] }
  0xf6   :  { %v298_v34 = vcombine.low %v284_v30, %v286_v31  ;;  %v404_v36 = vld [vmem:[#allocation2 + $0x39] ss:$2 sm:$0xf]  ;;  %303 = vst.msk [vmem:[#allocation3] sm:$0xff] %vm255_vm1, %v295_v29  ;;  %v377_v39 = vcombine.low %v357_v32, %v359_v23 }
  0xf7   :  { %341 = vrot.lane.b32.xlu1 %v334_v24, %s691_s8  ;;  %337 = vrot.lane.b32.xlu0 %v332_v25, %s691_s8  ;;  %v361_v33 = vld [vmem:[#allocation2 + $0x48] ss:$2 sm:$0xf]  ;;  %v276_v38 = vld [vmem:[#allocation2 + $0x20] ss:$2 sm:$0xf] }
  0xf8   :  { %v378_v35 = vcombine.low %v361_v33, %v363_v26  ;;  %v316_v37 = vld [vmem:[#allocation2 + $0x41] ss:$2 sm:$0xf]  ;;  %306 = vst.msk [vmem:[#allocation3 + $0x18] sm:$0xff] %vm255_vm1, %v298_v34 }
  0xf9   :  { %v278_v40 = vld [vmem:[#allocation2 + $0x30] ss:$2 sm:$0xf]  ;;  %v280_v41 = vld [vmem:[#allocation2 + $0x40] ss:$2 sm:$0xf] }
  0xfa   :  { %v296_v42 = vcombine.low %v276_v38, %v278_v40  ;;  %v282_v43 = vld [vmem:[#allocation2 + $0x50] ss:$2 sm:$0xf]  ;;  %v402_v48 = vld [vmem:[#allocation2 + $0x29] ss:$2 sm:$0xf] }
  0xfb   :  { %382 = vrot.lane.b32.xlu1 %v377_v39, %s690_s2  ;;  %384 = vrot.lane.b32.xlu0 %v378_v35, %s690_s2  ;;  %v297_v46 = vcombine.low %v280_v41, %v282_v43  ;;  %v318_v49 = vld [vmem:[#allocation2 + $0x51] ss:$2 sm:$0xf]  ;;  %v422_v50 = vcombine.low %v402_v48, %v404_v36  ;;  %v412_v52 = vld [vmem:[#allocation2 + $0x79] ss:$2 sm:$0xf] }
  0xfc   :  { %304 = vst.msk [vmem:[#allocation3 + $0x8] sm:$0xff] %vm255_vm1, %v296_v42  ;;  %v333_v51 = vcombine.low %v316_v37, %v318_v49  ;;  %v406_v53 = vld [vmem:[#allocation2 + $0x49] ss:$2 sm:$0xf] }
  0xfd   :  { %305 = vst.msk [vmem:[#allocation3 + $0x10] sm:$0xff] %vm255_vm1, %v297_v46  ;;  %v410_v54 = vld [vmem:[#allocation2 + $0x69] ss:$2 sm:$0xf] }
  0xfe   :  { %v408_v55 = vld [vmem:[#allocation2 + $0x59] ss:$2 sm:$0xf]  ;;  %v424_v56 = vcombine.low %v410_v54, %v412_v52 }
  0xff   :  { %427 = vrot.lane.b32.xlu1 %v422_v50, %s689_s0  ;;  %339 = vrot.lane.b32.xlu0 %v333_v51, %s691_s8  ;;  %v423_v57 = vcombine.low %v406_v53, %v408_v55 }
 0x103   :  { %431 = vrot.lane.b32.xlu1 %v424_v56, %s689_s0  ;;  %429 = vrot.lane.b32.xlu0 %v423_v57, %s689_s0 }
 0x160   :  { %v426_v58 = vpop.permute.xlu0 %425 }
 0x161   :  { %v381_v59 = vpop.permute.xlu1 %380 }
 0x164   :  { %v336_v60 = vpop.permute.xlu0 %335 }
 0x165   :  { %v387_v61 = vpop.permute.xlu1 %386  ;;  %348 = vst.msk [vmem:[#allocation3] sm:$0xff] %vm347_vm2, %v336_v60 }
 0x166   :  { %393 = vst.msk [vmem:[#allocation3] sm:$0xff] %vm392_vm3, %v381_v59 }
 0x167   :  { %438 = vst.msk [vmem:[#allocation3] sm:$0xff] %vm437_vm4, %v426_v58 }
 0x169   :  { %v342_v62 = vpop.permute.xlu1 %341  ;;  %v338_v63 = vpop.permute.xlu0 %337 }
 0x16a   :  { %351 = vst.msk [vmem:[#allocation3 + $0x18] sm:$0xff] %vm347_vm2, %v342_v62  ;;  %349 = vst.msk [vmem:[#allocation3 + $0x8] sm:$0xff] %vm347_vm2, %v338_v63 }
 0x16b   :  { %396 = vst.msk [vmem:[#allocation3 + $0x18] sm:$0xff] %vm392_vm3, %v387_v61 }
 0x16d   :  { %v383_v0 = vpop.permute.xlu1 %382  ;;  %v385_v1 = vpop.permute.xlu0 %384 }
 0x16e   :  { %394 = vst.msk [vmem:[#allocation3 + $0x8] sm:$0xff] %vm392_vm3, %v383_v0  ;;  %v442_v2 = vld [vmem:[#allocation3] sm:$0xff] }
 0x16f   :  { %666 = vmatprep.mubr.msk.f32.mxu1 %vm457_vm5, %v442_v2 }
 0x171   :  { %v428_v3 = vpop.permute.xlu1 %427  ;;  %v340_v4 = vpop.permute.xlu0 %339 }
 0x172   :  { %439 = vst.msk [vmem:[#allocation3 + $0x8] sm:$0xff] %vm437_vm4, %v428_v3 }
 0x173   :  { %350 = vst.msk [vmem:[#allocation3 + $0x10] sm:$0xff] %vm347_vm2, %v340_v4 }
 0x174   :  { %395 = vst.msk [vmem:[#allocation3 + $0x10] sm:$0xff] %vm392_vm3, %v385_v1 }
 0x175   :  { %v432_v5 = vpop.permute.xlu1 %431  ;;  %v430_v6 = vpop.permute.xlu0 %429 }
 0x176   :  { %441 = vst.msk [vmem:[#allocation3 + $0x18] sm:$0xff] %vm437_vm4, %v432_v5  ;;  %440 = vst.msk [vmem:[#allocation3 + $0x10] sm:$0xff] %vm437_vm4, %v430_v6 }
 0x179   :  { %v443_v7 = vld [vmem:[#allocation3 + $0x8] sm:$0xff] }
 0x17a   :  { %667 = vmatmul.mubr.msk.f32.vlgmr.msra.gmra.mrb[6].mxu1 %vm457_vm5, %v443_v7 }
 0x17d   :  { %v444_v8 = vld [vmem:[#allocation3 + $0x10] sm:$0xff]  ;;  %v445_v9 = vld [vmem:[#allocation3 + $0x18] sm:$0xff] }
 0x17e   :  { %669 = vmatprep.mubr.msk.f32.mxu1 %vm457_vm5, %v444_v8 }
 0x17f   :  { %670 = vmatmul.mubr.msk.f32.gmra.mrb[8].mxu1 %vm457_vm5, %v445_v9 }
 0x24d   :  { %v668_v11 = vpop.f32.mrb[6].mxu1 }
 0x24e   :  { %v542_v12 = vadd.f32 %v668_v11, %v599_v10  ;;  %v536_v13 = vpop.f32.mrb[7].mxu1 }
 0x24f   :  { %v537_v14 = vadd.f32 %v599_v10, %v536_v13 }
 0x250   :  { %v556_v15 = vmax.f32 %v542_v12, 0.0 }
 0x251   :  { %v555_v16 = vmax.f32 %v537_v14, 0.0 }
 0x252   :  { %560 = vst.msk [vmem:[%s897_s5 + $0x8] sm:$0xff] %vm45_vm0, %v556_v15  ;;  %v671_v17 = vpop.f32.mrb[8].mxu1 }
 0x253   :  { %559 = vst.msk [vmem:[%s897_s5] sm:$0xff] %vm45_vm0, %v555_v16  ;;  %v552_v18 = vadd.f32 %v671_v17, %v599_v10  ;;  %v546_v19 = vpop.f32.mrb[9].mxu1 }
 0x254   :  { %v547_v20 = vadd.f32 %v599_v10, %v546_v19 }
 0x255   :  { %v558_v21 = vmax.f32 %v552_v18, 0.0 }
 0x256   :  { %v557_v22 = vmax.f32 %v547_v20, 0.0 }
 0x257   :  { %562 = vst.msk [vmem:[%s897_s5 + $0x18] sm:$0xff] %vm45_vm0, %v558_v21 }
 0x258   :  { %561 = vst.msk [vmem:[%s897_s5 + $0x10] sm:$0xff] %vm45_vm0, %v557_v22 }

</bundles_post_ra>
